<compile_context>
chip_gen: v5e
topology: v5e:2x2
jax: 0.10.0
libtpu: 0.0.40
codegen_flags: <defaults>
</compile_context>

<pallas_src>
import functools

import jax
import jax.numpy as jnp
import numpy as np
from jax.experimental import pallas as pl
from jax.experimental.pallas import tpu as pltpu


def _round_up(v, m):
    return (v + m - 1) // m * m


def _bn_pad_kernel(scale_ref, shift_ref, x_ref, o_ref, *, H, W, pad):
    """One grid step over `blk` flattened (n, c) rows.

    scale_ref, shift_ref : (blk, 1)      f32
    x_ref                : (blk, H*W)    input dtype  (lane-dense)
    o_ref                : (blk, Hp*Wp)  output dtype (lane-dense)
    """
    scale = scale_ref[...]                                    # (blk, 1)
    shift = shift_ref[...]                                    # (blk, 1)

    # Dense, lane-aligned BN affine over the whole tile (single hoisted broadcast).
    y = x_ref[...].astype(jnp.float32) * scale + shift        # (blk, H*W) f32

    if pad == 0:
        o_ref[...] = y.astype(o_ref.dtype)
        return

    Wp = W + 2 * pad

    # Border value is BN(0) == shift: one dense, full-tile fill of the output block.
    o_ref[...] = jnp.broadcast_to(shift, o_ref.shape).astype(o_ref.dtype)

    # Interior: overwrite one contiguous lane segment per image row (static offsets).
    for h in range(H):
        start = (pad + h) * Wp + pad
        o_ref[:, start:start + W] = y[:, h * W:(h + 1) * W].astype(o_ref.dtype)


def bn_and_pad(x, weight, bias, running_mean, running_var, *, eps=1e-5, pad_pixels=1):
    """JAX/Pallas equivalent of BNAndPadLayer.forward (eval mode, affine=True)."""
    N, C, H, W = x.shape
    p = int(pad_pixels)
    Hp, Wp = H + 2 * p, W + 2 * p
    HW, HpWp = H * W, Hp * Wp

    # Fold the running statistics into a per-channel affine (f32).
    inv_std = 1.0 / jnp.sqrt(running_var.astype(jnp.float32) + eps)
    scale_c = weight.astype(jnp.float32) * inv_std
    shift_c = bias.astype(jnp.float32) - running_mean.astype(jnp.float32) * scale_c

    # Fold (N, C) into one row axis and flatten spatial dims -> lane-dense last dim.
    rows = N * C
    x2 = x.reshape(rows, HW)                                  # free reshape (row-major)
    scale = jnp.tile(scale_c, N).reshape(rows, 1)
    shift = jnp.tile(shift_c, N).reshape(rows, 1)

    itemsize = jnp.dtype(x.dtype).itemsize

    # ---- block-row sizing ---------------------------------------------------
    # (8,128)-tiled VMEM bytes per row for the in + out blocks (+ tiny scale/shift).
    tiled_row_bytes = itemsize * (_round_up(HW, 128) + _round_up(HpWp, 128)) + 2 * 4 * 128
    vmem_budget = 8 << 20          # single-copy in+out per step; x2 double-buffered < 32 MiB
    blk_vmem = max(8, vmem_budget // tiled_row_bytes)
    # TODO(synk): if even an 8-row block exceeds the budget (very large H*W planes), add a
    #             spatial tiling grid axis instead of relying on blk >= 8.

    hbm_row_bytes = itemsize * (HW + HpWp)
    min_rows = pl.cdiv(3 << 20, hbm_row_bytes)    # amortize ~0.35 us per-step overhead
    split_rows = pl.cdiv(rows, 8)                 # >= 8 grid steps when possible (v7x: 2 TCs)
    blk = min(blk_vmem, max(min_rows, split_rows), rows)
    if blk < rows:
        blk = max(8, (blk // 8) * 8)              # second-to-last block dim: multiple of 8
    grid = (pl.cdiv(rows, blk),)

    kernel = functools.partial(_bn_pad_kernel, H=H, W=W, pad=p)

    out2 = pl.pallas_call(
        kernel,
        out_shape=jax.ShapeDtypeStruct((rows, HpWp), x.dtype),
        grid=grid,
        in_specs=[
            pl.BlockSpec((blk, 1), lambda i: (i, 0)),     # scale  (per-row)
            pl.BlockSpec((blk, 1), lambda i: (i, 0)),     # shift  (per-row)
            pl.BlockSpec((blk, HW), lambda i: (i, 0)),    # x, flattened planes
        ],
        out_specs=pl.BlockSpec((blk, HpWp), lambda i: (i, 0)),
        compiler_params=pltpu.CompilerParams(
            dimension_semantics=("parallel",),
            vmem_limit_bytes=32 * 1024 * 1024,
        ),
        cost_estimate=pl.CostEstimate(
            flops=2 * rows * HW,
            transcendentals=0,
            bytes_accessed=itemsize * rows * (HW + HpWp) + 8 * rows,
        ),
    )(scale, shift, x2)

    return out2.reshape(N, C, Hp, Wp)


def _reference(x, weight, bias, running_mean, running_var, eps, pad_pixels):
    # pure-JAX reference of the PyTorch forward (eval mode, affine=True)
    inv_std = 1.0 / jnp.sqrt(running_var + eps)
    scale = weight * inv_std
    shift = bias - running_mean * scale
    y = x * scale[None, :, None, None] + shift[None, :, None, None]
    p = pad_pixels
    if p > 0:
        pad_vals = shift[None, :, None, None]
        y = jnp.pad(y, ((0, 0), (0, 0), (p, p), (p, p)))
        y = y.at[:, :, 0:p, :].set(pad_vals)
        y = y.at[:, :, -p:, :].set(pad_vals)
        y = y.at[:, :, :, 0:p].set(pad_vals)
        y = y.at[:, :, :, -p:].set(pad_vals)
    return y


if __name__ == "__main__":
    key = jax.random.PRNGKey(0)
    k1, k2, k3, k4, k5 = jax.random.split(key, 5)

    N, C, H, W = 2, 4, 16, 16
    pad_pixels = 2
    eps = 1e-5

    x = jax.random.normal(k1, (N, C, H, W), dtype=jnp.float32)
    # deterministic "trained" BN parameters / running stats
    weight = 1.0 + 0.1 * jax.random.normal(k2, (C,), dtype=jnp.float32)
    bias = 0.1 * jax.random.normal(k3, (C,), dtype=jnp.float32)
    running_mean = 0.2 * jax.random.normal(k4, (C,), dtype=jnp.float32)
    running_var = jnp.abs(1.0 + 0.1 * jax.random.normal(k5, (C,), dtype=jnp.float32))

    # padded path
    out = bn_and_pad(x, weight, bias, running_mean, running_var,
                     eps=eps, pad_pixels=pad_pixels)
    out = jax.block_until_ready(out)
    ref = _reference(x, weight, bias, running_mean, running_var, eps, pad_pixels)
    assert out.shape == (N, C, H + 2 * pad_pixels, W + 2 * pad_pixels)
    np.testing.assert_allclose(np.asarray(out), np.asarray(ref), rtol=1e-5, atol=1e-5)

    # pad_pixels = 0 path (plain eval-mode BN)
    out0 = bn_and_pad(x, weight, bias, running_mean, running_var,
                      eps=eps, pad_pixels=0)
    out0 = jax.block_until_ready(out0)
    ref0 = _reference(x, weight, bias, running_mean, running_var, eps, 0)
    np.testing.assert_allclose(np.asarray(out0), np.asarray(ref0), rtol=1e-5, atol=1e-5)

    print("KERNEL_OK")
</pallas_src>

<mosaic_0001>
module attributes {stable_mosaic.version = 11 : i64} {
  func.func @_bn_pad_kernel(%arg0: i32, %arg1: memref<8x1xf32, #tpu.memory_space<vmem>>, %arg2: memref<8x1xf32, #tpu.memory_space<vmem>>, %arg3: memref<8x256xf32, #tpu.memory_space<vmem>>, %arg4: memref<8x400xf32, #tpu.memory_space<vmem>>) attributes {dimension_semantics = [#tpu.dimension_semantics<parallel>], iteration_bounds = array<i64: 1>, scalar_prefetch = 0 : i64, scratch_operands = 0 : i64, tpu.core_type = #tpu.core_type<tc>, window_params = [{transform_indices = @transform_0, window_bounds = array<i64: 8, 1>}, {transform_indices = @transform_1, window_bounds = array<i64: 8, 1>}, {transform_indices = @transform_2, window_bounds = array<i64: 8, 256>}, {transform_indices = @transform_3, window_bounds = array<i64: 8, 400>}]} {
    %c0 = arith.constant 0 : index
    %c0_0 = arith.constant 0 : index
    %0 = vector.load %arg1[%c0, %c0_0] : memref<8x1xf32, #tpu.memory_space<vmem>>, vector<8x1xf32>
    %c0_1 = arith.constant 0 : index
    %c0_2 = arith.constant 0 : index
    %1 = vector.load %arg2[%c0_1, %c0_2] : memref<8x1xf32, #tpu.memory_space<vmem>>, vector<8x1xf32>
    %c0_3 = arith.constant 0 : index
    %c0_4 = arith.constant 0 : index
    %2 = vector.load %arg3[%c0_3, %c0_4] : memref<8x256xf32, #tpu.memory_space<vmem>>, vector<8x256xf32>
    %3 = vector.broadcast %0 : vector<8x1xf32> to vector<8x256xf32>
    %4 = arith.mulf %2, %3 : vector<8x256xf32>
    %5 = vector.broadcast %1 : vector<8x1xf32> to vector<8x256xf32>
    %6 = arith.addf %4, %5 : vector<8x256xf32>
    %7 = vector.shape_cast %1 : vector<8x1xf32> to vector<8x1xf32>
    %8 = vector.broadcast %7 : vector<8x1xf32> to vector<8x400xf32>
    %c0_5 = arith.constant 0 : index
    %c0_6 = arith.constant 0 : index
    %9 = vector.load %arg4[%c0_5, %c0_6] : memref<8x400xf32, #tpu.memory_space<vmem>>, vector<8x400xf32>
    tpu.vector_store %arg4[%c0_5, %c0_6], %8 {strides = array<i32>} : memref<8x400xf32, #tpu.memory_space<vmem>>, vector<8x400xf32>,
    %10 = vector.extract_strided_slice %6 {offsets = [0, 0], sizes = [8, 16], strides = [1, 1]} : vector<8x256xf32> to vector<8x16xf32>
    %c0_7 = arith.constant 0 : index
    %c42 = arith.constant 42 : index
    %11 = vector.load %arg4[%c0_7, %c42] : memref<8x400xf32, #tpu.memory_space<vmem>>, vector<8x16xf32>
    tpu.vector_store %arg4[%c0_7, %c42], %10 {strides = array<i32>} : memref<8x400xf32, #tpu.memory_space<vmem>>, vector<8x16xf32>,
    %12 = vector.extract_strided_slice %6 {offsets = [0, 16], sizes = [8, 16], strides = [1, 1]} : vector<8x256xf32> to vector<8x16xf32>
    %c0_8 = arith.constant 0 : index
    %c62 = arith.constant 62 : index
    %13 = vector.load %arg4[%c0_8, %c62] : memref<8x400xf32, #tpu.memory_space<vmem>>, vector<8x16xf32>
    tpu.vector_store %arg4[%c0_8, %c62], %12 {strides = array<i32>} : memref<8x400xf32, #tpu.memory_space<vmem>>, vector<8x16xf32>,
    %14 = vector.extract_strided_slice %6 {offsets = [0, 32], sizes = [8, 16], strides = [1, 1]} : vector<8x256xf32> to vector<8x16xf32>
    %c0_9 = arith.constant 0 : index
    %c82 = arith.constant 82 : index
    %15 = vector.load %arg4[%c0_9, %c82] : memref<8x400xf32, #tpu.memory_space<vmem>>, vector<8x16xf32>
    tpu.vector_store %arg4[%c0_9, %c82], %14 {strides = array<i32>} : memref<8x400xf32, #tpu.memory_space<vmem>>, vector<8x16xf32>,
    %16 = vector.extract_strided_slice %6 {offsets = [0, 48], sizes = [8, 16], strides = [1, 1]} : vector<8x256xf32> to vector<8x16xf32>
    %c0_10 = arith.constant 0 : index
    %c102 = arith.constant 102 : index
    %17 = vector.load %arg4[%c0_10, %c102] : memref<8x400xf32, #tpu.memory_space<vmem>>, vector<8x16xf32>
    tpu.vector_store %arg4[%c0_10, %c102], %16 {strides = array<i32>} : memref<8x400xf32, #tpu.memory_space<vmem>>, vector<8x16xf32>,
    %18 = vector.extract_strided_slice %6 {offsets = [0, 64], sizes = [8, 16], strides = [1, 1]} : vector<8x256xf32> to vector<8x16xf32>
    %c0_11 = arith.constant 0 : index
    %c122 = arith.constant 122 : index
    %19 = vector.load %arg4[%c0_11, %c122] : memref<8x400xf32, #tpu.memory_space<vmem>>, vector<8x16xf32>
    tpu.vector_store %arg4[%c0_11, %c122], %18 {strides = array<i32>} : memref<8x400xf32, #tpu.memory_space<vmem>>, vector<8x16xf32>,
    %20 = vector.extract_strided_slice %6 {offsets = [0, 80], sizes = [8, 16], strides = [1, 1]} : vector<8x256xf32> to vector<8x16xf32>
    %c0_12 = arith.constant 0 : index
    %c142 = arith.constant 142 : index
    %21 = vector.load %arg4[%c0_12, %c142] : memref<8x400xf32, #tpu.memory_space<vmem>>, vector<8x16xf32>
    tpu.vector_store %arg4[%c0_12, %c142], %20 {strides = array<i32>} : memref<8x400xf32, #tpu.memory_space<vmem>>, vector<8x16xf32>,
    %22 = vector.extract_strided_slice %6 {offsets = [0, 96], sizes = [8, 16], strides = [1, 1]} : vector<8x256xf32> to vector<8x16xf32>
    %c0_13 = arith.constant 0 : index
    %c162 = arith.constant 162 : index
    %23 = vector.load %arg4[%c0_13, %c162] : memref<8x400xf32, #tpu.memory_space<vmem>>, vector<8x16xf32>
    tpu.vector_store %arg4[%c0_13, %c162], %22 {strides = array<i32>} : memref<8x400xf32, #tpu.memory_space<vmem>>, vector<8x16xf32>,
    %24 = vector.extract_strided_slice %6 {offsets = [0, 112], sizes = [8, 16], strides = [1, 1]} : vector<8x256xf32> to vector<8x16xf32>
    %c0_14 = arith.constant 0 : index
    %c182 = arith.constant 182 : index
    %25 = vector.load %arg4[%c0_14, %c182] : memref<8x400xf32, #tpu.memory_space<vmem>>, vector<8x16xf32>
    tpu.vector_store %arg4[%c0_14, %c182], %24 {strides = array<i32>} : memref<8x400xf32, #tpu.memory_space<vmem>>, vector<8x16xf32>,
    %26 = vector.extract_strided_slice %6 {offsets = [0, 128], sizes = [8, 16], strides = [1, 1]} : vector<8x256xf32> to vector<8x16xf32>
    %c0_15 = arith.constant 0 : index
    %c202 = arith.constant 202 : index
    %27 = vector.load %arg4[%c0_15, %c202] : memref<8x400xf32, #tpu.memory_space<vmem>>, vector<8x16xf32>
    tpu.vector_store %arg4[%c0_15, %c202], %26 {strides = array<i32>} : memref<8x400xf32, #tpu.memory_space<vmem>>, vector<8x16xf32>,
    %28 = vector.extract_strided_slice %6 {offsets = [0, 144], sizes = [8, 16], strides = [1, 1]} : vector<8x256xf32> to vector<8x16xf32>
    %c0_16 = arith.constant 0 : index
    %c222 = arith.constant 222 : index
    %29 = vector.load %arg4[%c0_16, %c222] : memref<8x400xf32, #tpu.memory_space<vmem>>, vector<8x16xf32>
    tpu.vector_store %arg4[%c0_16, %c222], %28 {strides = array<i32>} : memref<8x400xf32, #tpu.memory_space<vmem>>, vector<8x16xf32>,
    %30 = vector.extract_strided_slice %6 {offsets = [0, 160], sizes = [8, 16], strides = [1, 1]} : vector<8x256xf32> to vector<8x16xf32>
    %c0_17 = arith.constant 0 : index
    %c242 = arith.constant 242 : index
    %31 = vector.load %arg4[%c0_17, %c242] : memref<8x400xf32, #tpu.memory_space<vmem>>, vector<8x16xf32>
    tpu.vector_store %arg4[%c0_17, %c242], %30 {strides = array<i32>} : memref<8x400xf32, #tpu.memory_space<vmem>>, vector<8x16xf32>,
    %32 = vector.extract_strided_slice %6 {offsets = [0, 176], sizes = [8, 16], strides = [1, 1]} : vector<8x256xf32> to vector<8x16xf32>
    %c0_18 = arith.constant 0 : index
    %c262 = arith.constant 262 : index
    %33 = vector.load %arg4[%c0_18, %c262] : memref<8x400xf32, #tpu.memory_space<vmem>>, vector<8x16xf32>
    tpu.vector_store %arg4[%c0_18, %c262], %32 {strides = array<i32>} : memref<8x400xf32, #tpu.memory_space<vmem>>, vector<8x16xf32>,
    %34 = vector.extract_strided_slice %6 {offsets = [0, 192], sizes = [8, 16], strides = [1, 1]} : vector<8x256xf32> to vector<8x16xf32>
    %c0_19 = arith.constant 0 : index
    %c282 = arith.constant 282 : index
    %35 = vector.load %arg4[%c0_19, %c282] : memref<8x400xf32, #tpu.memory_space<vmem>>, vector<8x16xf32>
    tpu.vector_store %arg4[%c0_19, %c282], %34 {strides = array<i32>} : memref<8x400xf32, #tpu.memory_space<vmem>>, vector<8x16xf32>,
    %36 = vector.extract_strided_slice %6 {offsets = [0, 208], sizes = [8, 16], strides = [1, 1]} : vector<8x256xf32> to vector<8x16xf32>
    %c0_20 = arith.constant 0 : index
    %c302 = arith.constant 302 : index
    %37 = vector.load %arg4[%c0_20, %c302] : memref<8x400xf32, #tpu.memory_space<vmem>>, vector<8x16xf32>
    tpu.vector_store %arg4[%c0_20, %c302], %36 {strides = array<i32>} : memref<8x400xf32, #tpu.memory_space<vmem>>, vector<8x16xf32>,
    %38 = vector.extract_strided_slice %6 {offsets = [0, 224], sizes = [8, 16], strides = [1, 1]} : vector<8x256xf32> to vector<8x16xf32>
    %c0_21 = arith.constant 0 : index
    %c322 = arith.constant 322 : index
    %39 = vector.load %arg4[%c0_21, %c322] : memref<8x400xf32, #tpu.memory_space<vmem>>, vector<8x16xf32>
    tpu.vector_store %arg4[%c0_21, %c322], %38 {strides = array<i32>} : memref<8x400xf32, #tpu.memory_space<vmem>>, vector<8x16xf32>,
    %40 = vector.extract_strided_slice %6 {offsets = [0, 240], sizes = [8, 16], strides = [1, 1]} : vector<8x256xf32> to vector<8x16xf32>
    %c0_22 = arith.constant 0 : index
    %c342 = arith.constant 342 : index
    %41 = vector.load %arg4[%c0_22, %c342] : memref<8x400xf32, #tpu.memory_space<vmem>>, vector<8x16xf32>
    tpu.vector_store %arg4[%c0_22, %c342], %40 {strides = array<i32>} : memref<8x400xf32, #tpu.memory_space<vmem>>, vector<8x16xf32>,
    return
  }
  func.func @transform_0(%arg0: i32) -> (i32, i32) {
    %c0_i32 = arith.constant 0 : i32
    %c0_i32_0 = arith.constant 0 : i32
    return %arg0, %c0_i32 : i32, i32
  }
  func.func @transform_1(%arg0: i32) -> (i32, i32) {
    %c0_i32 = arith.constant 0 : i32
    %c0_i32_0 = arith.constant 0 : i32
    return %arg0, %c0_i32 : i32, i32
  }
  func.func @transform_2(%arg0: i32) -> (i32, i32) {
    %c0_i32 = arith.constant 0 : i32
    %c0_i32_0 = arith.constant 0 : i32
    return %arg0, %c0_i32 : i32, i32
  }
  func.func @transform_3(%arg0: i32) -> (i32, i32) {
    %c0_i32 = arith.constant 0 : i32
    %c0_i32_0 = arith.constant 0 : i32
    return %arg0, %c0_i32 : i32, i32
  }
}

</mosaic_0001>

<bundles_post_ra>
// kernel: tpu_custom_call.1
= control target key start
LH: loop header
LB: loop body
LE: loop exit
PB: predicated region body
PF: predicated region fallthrough
CT: control target
= control target key end

     0   :  { %v185_v1 = vmov 0   ;;  %s238_s0 = inlined_call_operand.vmem [shape: f32[8,1], index: 0, kind: input, shape index: {}]   ;;  %s239_s1 = inlined_call_operand.vmem [shape: f32[8,1], index: 1, kind: input, shape index: {}]   ;;  %s240_s2 = inlined_call_operand.vmem [shape: f32[8,256], index: 2, kind: input, shape index: {}]   ;;  %s241_s3 = inlined_call_operand.hbm [shape: f32[8,400], index: 3, kind: output, shape index: {}]  }
   0x1   :  { %v15_v0 = vld [vmem:[%s238_s0] sm:$0xff]  ;;  %158 = vset.pattern.permute.xlu0 %v185_v1 }
   0x2   :  { %8 = vsyncpa [#allocation3], 0  ;;  %21 = vperm.xlu0 %158, %v15_v0   ;;  %v16_v2 = vld [vmem:[%s239_s1] sm:$0xff]  ;;  %vm36_vm0 = vcmask 130048   ;;  %s186_s0 = smov 66   ;;  %s187_s18 = smov 62  }
   0x3   :  { %v17_v4 = vld [vmem:[%s240_s2] sm:$0xff]  ;;  %v18_v8 = vld [vmem:[%s240_s2 + $0x8] sm:$0xff]  ;;  %s188_s1 = smov 42   ;;  %s189_s21 = smov 70   ;;  %vm97_vm1 = vcmask 15360   ;;  %vm42_vm2 = vcmask 474448  }
   0x4   :  { %s190_s22 = smov 82   ;;  %s191_s23 = smov 58   ;;  %vm47_vm3 = vcmask 638448   ;;  %vm52_vm4 = vcmask 802448   ;;  %vm57_vm5 = vcmask 966448   ;;  %vm62_vm6 = vcmask 1048528  }
   0x5   :  { %s192_s24 = smov 74   ;;  %s193_s25 = smov 46   ;;  %vm64_vm7 = vcmask 80896   ;;  %vm69_vm8 = vcmask 244848   ;;  %vm74_vm9 = vcmask 408848   ;;  %vm79_vm10 = vcmask 572848  }
   0x6   :  { %s194_s26 = smov 86   ;;  %s195_s27 = smov 78   ;;  %vm85_vm11 = vcmask 736848   ;;  %vm102_vm12 = vcmask 179248   ;;  %vm90_vm13 = vcmask 900848   ;;  %vm95_vm14 = vcmask 1048464  }
   0x7   :  { %s196_s2 = smov 50   ;;  %s197_s28 = smov 90   ;;  %vm107_vm15 = vcmask 343248  }
   0x8   :  { %s198_s29 = smov 54   ;;  %s199_s30 = smov 94  }
   0x9   :  { %s200_s4 = smov 102   ;;  %s201_s5 = smov 98  }
   0xa   :  { %28 = vperm.xlu0 %158, %v16_v2   ;;  %s202_s6 = smov [#allocation2]   ;;  %s131_s10 = sshll.u32 %s241_s3, 4  ;;  %s132_s10 = int_to_ptr.hbm [resolvable:$true] %s131_s10 }
   0xb   :  { %s129_s7 = sshll.u32 %s202_s6, 4  ;;  %s130_s7 = int_to_ptr.vmem [resolvable:$true] %s129_s7 }
  0x74   :  { %v22_v3 = vpop.permute.xlu0 %21 }
  0x75   :  { %v24_v5 = vmul.f32 %v22_v3, %v17_v4  ;;  %v25_v9 = vmul.f32 %v22_v3, %v18_v8 }
  0x7c   :  { %v29_v6 = vpop.permute.xlu0 %28 }
  0x7d   :  { %v31_v7 = vadd.f32 %v29_v6, %v24_v5  ;;  %33 = vst [vmem:[#allocation2] sm:$0xff] %v29_v6  ;;  %v32_v10 = vadd.f32 %v29_v6, %v25_v9 }
  0x7e   :  { %34 = vst [vmem:[#allocation2 + $0x8] sm:$0xff] %v29_v6 }
  0x7f   :  { %35 = vst [vmem:[#allocation2 + $0x10] sm:$0xff] %v29_v6  ;;  %71 = vrot.lane.b32.xlu0 %v31_v7, %s186_s0  ;;  %66 = vrot.lane.b32.xlu2 %v31_v7, %s187_s18 }
  0x80   :  { %39 = vrot.lane.b32.xlu1 %v31_v7, %s188_s1  ;;  %37 = vst.msk [vmem:[#allocation2 + $0x18] sm:$0xff] %vm36_vm0, %v29_v6  ;;  %vm112_vm0 = vcmask 507248  }
  0x87   :  { %76 = vrot.lane.b32.xlu0 %v31_v7, %s189_s21  ;;  %92 = vrot.lane.b32.xlu2 %v32_v10, %s190_s22 }
  0x88   :  { %59 = vrot.lane.b32.xlu1 %v31_v7, %s191_s23 }
  0x8f   :  { %82 = vrot.lane.b32.xlu0 %v32_v10, %s192_s24  ;;  %44 = vrot.lane.b32.xlu2 %v31_v7, %s193_s25 }
  0x90   :  { %99 = vrot.lane.b32.xlu1 %v32_v10, %s194_s26 }
  0x97   :  { %87 = vrot.lane.b32.xlu0 %v32_v10, %s195_s27  ;;  %49 = vrot.lane.b32.xlu2 %v31_v7, %s196_s2 }
  0x98   :  { %104 = vrot.lane.b32.xlu1 %v32_v10, %s197_s28 }
  0x9f   :  { %54 = vrot.lane.b32.xlu2 %v31_v7, %s198_s29 }
  0xa0   :  { %109 = vrot.lane.b32.xlu1 %v32_v10, %s199_s30 }
  0xa7   :  { %119 = vrot.lane.b32.xlu2 %v32_v10, %s200_s4 }
  0xa8   :  { %114 = vrot.lane.b32.xlu1 %v32_v10, %s201_s5 }
  0xd9   :  { %v67_v11 = vpop.permute.xlu2 %66 }
  0xe1   :  { %v93_v12 = vpop.permute.xlu2 %92 }
  0xe2   :  { %98 = vst.msk [vmem:[#allocation2 + $0x10] sm:$0xff] %vm97_vm1, %v93_v12  ;;  %vm117_vm1 = vcmask 671248  }
  0xe9   :  { %v45_v13 = vpop.permute.xlu2 %44 }
  0xf1   :  { %v72_v14 = vpop.permute.xlu0 %71  ;;  %v50_v15 = vpop.permute.xlu2 %49 }
  0xf2   :  { %v40_v16 = vpop.permute.xlu1 %39 }
  0xf3   :  { %43 = vst.msk [vmem:[#allocation2] sm:$0xff] %vm42_vm2, %v40_v16  ;;  %vm122_vm2 = vcmask 835248  }
  0xf4   :  { %48 = vst.msk [vmem:[#allocation2] sm:$0xff] %vm47_vm3, %v45_v13 }
  0xf5   :  { %53 = vst.msk [vmem:[#allocation2] sm:$0xff] %vm52_vm4, %v50_v15 }
  0xf9   :  { %v77_v17 = vpop.permute.xlu0 %76  ;;  %v55_v18 = vpop.permute.xlu2 %54 }
  0xfa   :  { %58 = vst.msk [vmem:[#allocation2] sm:$0xff] %vm57_vm5, %v55_v18  ;;  %v60_v19 = vpop.permute.xlu1 %59 }
  0xfb   :  { %63 = vst.msk [vmem:[#allocation2] sm:$0xff] %vm62_vm6, %v60_v19 }
  0xfc   :  { %65 = vst.msk [vmem:[#allocation2 + $0x8] sm:$0xff] %vm64_vm7, %v60_v19 }
  0xfd   :  { %70 = vst.msk [vmem:[#allocation2 + $0x8] sm:$0xff] %vm69_vm8, %v67_v11 }
  0xfe   :  { %75 = vst.msk [vmem:[#allocation2 + $0x8] sm:$0xff] %vm74_vm9, %v72_v14 }
  0xff   :  { %80 = vst.msk [vmem:[#allocation2 + $0x8] sm:$0xff] %vm79_vm10, %v77_v17 }
 0x101   :  { %v83_v20 = vpop.permute.xlu0 %82  ;;  %v120_v26 = vpop.permute.xlu2 %119 }
 0x102   :  { %86 = vst.msk [vmem:[#allocation2 + $0x8] sm:$0xff] %vm85_vm11, %v83_v20  ;;  %v100_v21 = vpop.permute.xlu1 %99 }
 0x103   :  { %103 = vst.msk [vmem:[#allocation2 + $0x10] sm:$0xff] %vm102_vm12, %v100_v21 }
 0x109   :  { %v88_v22 = vpop.permute.xlu0 %87 }
 0x10a   :  { %91 = vst.msk [vmem:[#allocation2 + $0x8] sm:$0xff] %vm90_vm13, %v88_v22  ;;  %v105_v23 = vpop.permute.xlu1 %104 }
 0x10b   :  { %96 = vst.msk [vmem:[#allocation2 + $0x8] sm:$0xff] %vm95_vm14, %v93_v12 }
 0x10c   :  { %108 = vst.msk [vmem:[#allocation2 + $0x10] sm:$0xff] %vm107_vm15, %v105_v23 }
 0x112   :  { %v110_v24 = vpop.permute.xlu1 %109 }
 0x113   :  { %113 = vst.msk [vmem:[#allocation2 + $0x10] sm:$0xff] %vm112_vm0, %v110_v24 }
 0x11a   :  { %v115_v25 = vpop.permute.xlu1 %114 }
 0x11b   :  { %118 = vst.msk [vmem:[#allocation2 + $0x10] sm:$0xff] %vm117_vm1, %v115_v25 }
 0x11c   :  { %123 = vst.msk [vmem:[#allocation2 + $0x10] sm:$0xff] %vm122_vm2, %v120_v26 }
 0x11d   :  { %134 = dma.vmem_to_hbm [thread:$0]  %s130_s7, 512, %s132_s10, [#allocation3]  }
 0x11e   :  { %183 = dma.done.wait [#allocation3], 512  }
 0x11f   :  { %184 = vsyncadd [#allocation3], 4294966784 }
 0x120   :  { %139 = vsyncpa [#allocation3], 1 }

</bundles_post_ra>
